<compile_context>
chip_gen: v6e
topology: v6e:2x2x1
jax: 0.10.0
libtpu: 0.0.40
codegen_flags: <defaults>
</compile_context>

<pallas_src>
import functools

import jax
import jax.numpy as jnp
from jax.experimental import pallas as pl
from jax.experimental.pallas import tpu as pltpu


def _round_up(x, m):
    return (x + m - 1) // m * m


def _ffn_kernel(x_ref, w1_ref, b1_ref, w2_ref, b2_ref, o_ref, acc_ref):
    # Grid = (row tiles, hidden chunks).  x/out row blocks are constant over
    # the hidden axis (fetched / written once per row tile); weights stream
    # per hidden chunk; acc_ref is the f32 accumulator for the output tile.
    c = pl.program_id(1)
    x = x_ref[...]                       # native dtype (bf16 stays bf16)

    @pl.when(c == 0)
    def _():                             # residual + final bias, once per row tile
        acc_ref[...] = x.astype(jnp.float32) + b2_ref[...]

    # conv1 (kernel_size=1) == x @ W1^T[:, chunk] + b1[chunk]; f32 MXU accum.
    xw = x if x.dtype == w1_ref.dtype else x.astype(w1_ref.dtype)
    h = jnp.dot(xw, w1_ref[...], preferred_element_type=jnp.float32) + b1_ref[...]
    h = jnp.maximum(h, 0.0)              # ReLU (dropout1 identity at inference)
    h = h.astype(w2_ref.dtype)
    # conv2 contribution of this hidden chunk (dropout2 identity).
    acc_ref[...] += jnp.dot(h, w2_ref[...], preferred_element_type=jnp.float32)

    @pl.when(c == pl.num_programs(1) - 1)
    def _():                             # single fused downcast + store per tile
        o_ref[...] = acc_ref[...].astype(o_ref.dtype)


def prepare_ffn_params(w1, b1, w2, b2, dtype=None):
    """One-time weight prep (call at model setup, NOT per forward call).

    Transposes the Conv1d(kernel_size=1) weights to (H_in, H_out) and
    zero-pads only the *intermediate* (hidden) dim to a multiple of 128 so it
    can be chunked on a lane-aligned grid axis.  Zero padding is exact:
    padded hidden columns of W1^T / b1 produce zeros which meet zero rows of
    W2^T, contributing nothing.  Activations are never padded.

    `dtype=jnp.bfloat16` is the recommended production setting (halves weight
    traffic, MXU-native); biases stay f32 (tiny, added to the f32 accumulator).
    """
    H = w1.shape[0]
    assert w1.shape == (H, H) and w2.shape == (H, H)
    if dtype is not None:
        w1 = w1.astype(dtype)
        w2 = w2.astype(dtype)
    b1 = b1.astype(jnp.float32)
    b2 = b2.astype(jnp.float32)

    Hh = _round_up(H, 128)               # padded intermediate dim (weights only)
    if Hh == H:
        w1t = jnp.transpose(w1)                              # (H, Hh)
        b1r = b1.reshape(1, H)                               # (1, Hh)
        w2t = jnp.transpose(w2)                              # (Hh, H)
    else:
        w1t = jnp.zeros((H, Hh), w1.dtype).at[:, :H].set(jnp.transpose(w1))
        b1r = jnp.zeros((1, Hh), jnp.float32).at[0, :H].set(b1)
        w2t = jnp.zeros((Hh, H), w2.dtype).at[:H, :].set(jnp.transpose(w2))
    b2r = b2.reshape(1, H)
    return w1t, b1r, w2t, b2r


@functools.partial(jax.jit, static_argnames=("tm", "hidden_block"))
def pointwise_feed_forward(x, w1t, b1r, w2t, b2r, *, tm=512, hidden_block=None):
    """x: (B, L, H).  w1t: (H, Hh), b1r: (1, Hh), w2t: (Hh, H), b2r: (1, H)
    from prepare_ffn_params.  Returns (B, L, H) in x.dtype."""
    B, L, H = x.shape
    Hh = w1t.shape[1]
    assert w1t.shape == (H, Hh) and w2t.shape == (Hh, H)
    assert b1r.shape == (1, Hh) and b2r.shape == (1, H)
    assert Hh % 128 == 0 and Hh >= H

    rows = B * L
    x2d = x.reshape(rows, H)             # contiguous reshape: no HBM copy

    xs = jnp.dtype(x.dtype).itemsize
    ws = jnp.dtype(w1t.dtype).itemsize

    # Generation-aware VMEM policy (v5e/v6e: 128 MiB physical, v7x: 64 MiB).
    try:
        vmem_cap = int(getattr(pltpu.get_tpu_info(), "vmem_capacity_bytes",
                               64 * 1024 * 1024))
    except Exception:
        vmem_cap = 64 * 1024 * 1024      # conservative (v7x) fallback
    vmem_target = vmem_cap * 3 // 4      # budget used for tile sizing
    vmem_limit = vmem_cap * 85 // 100    # scoped limit, headroom below physical

    # Hidden (intermediate) dim chunk: largest 128-aligned divisor of Hh whose
    # double-buffered W1/W2 chunks fit half the budget.  n_chunks == 1 for all
    # SASRec-sized H; chunking only kicks in when resident weights would blow
    # VMEM (notably on v7x for H in the multi-thousand range).
    if hidden_block is None:
        k = Hh // 128
        th = 128
        for d in range(1, k + 1):
            if k % d:
                continue
            cand = (k // d) * 128
            if 2 * 2 * H * cand * ws <= vmem_target // 2:
                th = cand
                break
    else:
        th = int(hidden_block)
        assert Hh % th == 0 and (th % 128 == 0 or th == Hh)
    n_chunks = Hh // th

    def _budget(tm_):
        weights = 2 * 2 * H * th * ws + 2 * (th + H) * 4   # W chunks (x2 buf) + biases
        row_io = 2 * 2 * tm_ * H * xs                      # x + out tiles (x2 buf each)
        scratch = tm_ * H * 4                              # f32 accumulator
        temps = tm_ * th * (4 + ws) + tm_ * H * 4          # h (f32 + cast) + 2nd dot
        return weights + row_io + scratch + temps

    # Row tile: dtype-sublane aligned, >=2 row steps when possible (both v7x
    # TensorCores via the "parallel" axis), shrunk until the budget fits.
    sub = max(8, 32 // xs)               # 8 f32 / 16 bf16 / 32 int8
    tm = max(sub, min(int(tm), _round_up(rows, sub)))
    tm = _round_up(tm, sub)
    if rows >= 2 * sub:
        tm = min(tm, _round_up((rows + 1) // 2, sub))
    while tm > 2 * sub and _budget(tm) > vmem_target:
        tm = _round_up(tm // 2, sub)

    grid = (pl.cdiv(rows, tm), n_chunks)  # ragged last row block is masked by Pallas

    out = pl.pallas_call(
        _ffn_kernel,
        out_shape=jax.ShapeDtypeStruct((rows, H), x.dtype),
        grid_spec=pltpu.PrefetchScalarGridSpec(
            num_scalar_prefetch=0,
            grid=grid,
            in_specs=[
                pl.BlockSpec((tm, H), lambda i, c: (i, 0)),   # x rows (1 fetch / row tile)
                pl.BlockSpec((H, th), lambda i, c: (0, c)),   # W1^T hidden chunk
                pl.BlockSpec((1, th), lambda i, c: (0, c)),   # b1 chunk (f32)
                pl.BlockSpec((th, H), lambda i, c: (c, 0)),   # W2^T hidden chunk
                pl.BlockSpec((1, H), lambda i, c: (0, 0)),    # b2 (f32)
            ],
            out_specs=pl.BlockSpec((tm, H), lambda i, c: (i, 0)),  # 1 store / row tile
            scratch_shapes=[pltpu.VMEM((tm, H), jnp.float32)],     # f32 accumulator
        ),
        compiler_params=pltpu.CompilerParams(
            dimension_semantics=("parallel", "arbitrary"),
            vmem_limit_bytes=int(vmem_limit),
        ),
    )(x2d, w1t, b1r, w2t, b2r)

    return out.reshape(B, L, H)


def _reference(x, w1, b1, w2, b2):
    # pure-JAX reference of the PyTorch forward (dropout = identity in eval)
    hp = jax.lax.Precision.HIGHEST
    h = jnp.einsum("blh,oh->blo", x, w1, precision=hp) + b1
    h = jnp.maximum(h, 0.0)
    y = jnp.einsum("blh,oh->blo", h, w2, precision=hp) + b2
    return y + x


if __name__ == "__main__":
    key = jax.random.PRNGKey(0)

    def make_params(k, H):
        # PyTorch Conv1d default init: U(-1/sqrt(fan_in), 1/sqrt(fan_in)), fan_in = H*1
        k1, kb1, k2, kb2 = jax.random.split(k, 4)
        bound = 1.0 / (H ** 0.5)
        w1 = jax.random.uniform(k1, (H, H), minval=-bound, maxval=bound, dtype=jnp.float32)
        b1 = jax.random.uniform(kb1, (H,), minval=-bound, maxval=bound, dtype=jnp.float32)
        w2 = jax.random.uniform(k2, (H, H), minval=-bound, maxval=bound, dtype=jnp.float32)
        b2 = jax.random.uniform(kb2, (H,), minval=-bound, maxval=bound, dtype=jnp.float32)
        return w1, b1, w2, b2

    # 1) f32, SASRec-small shapes (no activation padding, 2 row-grid steps).
    kx, kp, key = jax.random.split(key, 3)
    B, L, H = 2, 8, 32
    x = jax.random.normal(kx, (B, L, H), dtype=jnp.float32)
    w1, b1, w2, b2 = make_params(kp, H)
    params = prepare_ffn_params(w1, b1, w2, b2)
    out = jax.block_until_ready(pointwise_feed_forward(x, *params))
    ref = _reference(x, w1, b1, w2, b2)
    assert out.shape == (B, L, H) and out.dtype == x.dtype
    assert jnp.allclose(out, ref, atol=1e-4, rtol=1e-4), "f32 mismatch vs reference"

    # 2) bf16 I/O (recommended production config) + ragged row count.
    kx2, kp2, key = jax.random.split(key, 3)
    B2, L2, H2 = 2, 9, 32
    xb = jax.random.normal(kx2, (B2, L2, H2), dtype=jnp.float32).astype(jnp.bfloat16)
    w1b, b1b, w2b, b2b = make_params(kp2, H2)
    params_b = prepare_ffn_params(w1b, b1b, w2b, b2b, dtype=jnp.bfloat16)
    outb = jax.block_until_ready(pointwise_feed_forward(xb, *params_b))
    refb = _reference(xb.astype(jnp.float32),
                      w1b.astype(jnp.bfloat16).astype(jnp.float32), b1b,
                      w2b.astype(jnp.bfloat16).astype(jnp.float32), b2b)
    assert outb.dtype == jnp.bfloat16
    assert jnp.allclose(outb.astype(jnp.float32), refb, atol=5e-2, rtol=5e-2), \
        "bf16 mismatch vs reference"

    # 3) hidden-dim chunked path (forced 2 chunks of 128) + ragged rows.
    kx3, kp3, key = jax.random.split(key, 3)
    B3, L3, H3 = 2, 9, 256
    x3 = jax.random.normal(kx3, (B3, L3, H3), dtype=jnp.float32)
    w13, b13, w23, b23 = make_params(kp3, H3)
    params3 = prepare_ffn_params(w13, b13, w23, b23)
    out3 = jax.block_until_ready(pointwise_feed_forward(x3, *params3, hidden_block=128))
    ref3 = _reference(x3, w13, b13, w23, b23)
    assert jnp.allclose(out3, ref3, atol=1e-4, rtol=1e-4), "chunked mismatch vs reference"

    print("KERNEL_OK")
</pallas_src>

<mosaic_0001>
module attributes {stable_mosaic.version = 11 : i64} {
  func.func @_ffn_kernel(%arg0: i32, %arg1: i32, %arg2: memref<8x32xf32, #tpu.memory_space<vmem>>, %arg3: memref<32x128xf32, #tpu.memory_space<vmem>>, %arg4: memref<1x128xf32, #tpu.memory_space<vmem>>, %arg5: memref<128x32xf32, #tpu.memory_space<vmem>>, %arg6: memref<1x32xf32, #tpu.memory_space<vmem>>, %arg7: memref<8x32xf32, #tpu.memory_space<vmem>>, %arg8: memref<8x32xf32, #tpu.memory_space<vmem>>) attributes {dimension_semantics = [#tpu.dimension_semantics<parallel>, #tpu.dimension_semantics<arbitrary>], iteration_bounds = array<i64: 2, 1>, scalar_prefetch = 0 : i64, scratch_operands = 1 : i64, tpu.core_type = #tpu.core_type<tc>, window_params = [{transform_indices = @transform_0, window_bounds = array<i64: 8, 32>}, {transform_indices = @transform_1, window_bounds = array<i64: 32, 128>}, {transform_indices = @transform_2, window_bounds = array<i64: 1, 128>}, {transform_indices = @transform_3, window_bounds = array<i64: 128, 32>}, {pipeline_mode = #tpu.pipeline_mode<synchronous>, transform_indices = @transform_4, window_bounds = array<i64: 1, 32>}, {transform_indices = @transform_5, window_bounds = array<i64: 8, 32>}]} {
    %c0 = arith.constant 0 : index
    %c0_0 = arith.constant 0 : index
    %0 = vector.load %arg2[%c0, %c0_0] : memref<8x32xf32, #tpu.memory_space<vmem>>, vector<8x32xf32>
    %c0_i32 = arith.constant 0 : i32
    %1 = arith.cmpi eq, %arg1, %c0_i32 : i32
    %2 = arith.extui %1 : i1 to i32
    %c0_i32_1 = arith.constant 0 : i32
    %3 = arith.cmpi ne, %2, %c0_i32_1 : i32
    scf.if %3 {
      %c0_16 = arith.constant 0 : index
      %c0_17 = arith.constant 0 : index
      %19 = vector.load %arg6[%c0_16, %c0_17] : memref<1x32xf32, #tpu.memory_space<vmem>>, vector<1x32xf32>
      %20 = vector.broadcast %19 : vector<1x32xf32> to vector<8x32xf32>
      %21 = arith.addf %0, %20 : vector<8x32xf32>
      %c0_18 = arith.constant 0 : index
      %c0_19 = arith.constant 0 : index
      %22 = vector.load %arg8[%c0_18, %c0_19] : memref<8x32xf32, #tpu.memory_space<vmem>>, vector<8x32xf32>
      tpu.vector_store %arg8[%c0_18, %c0_19], %21 {strides = array<i32>} : memref<8x32xf32, #tpu.memory_space<vmem>>, vector<8x32xf32>,
    } else {
    }
    %c0_2 = arith.constant 0 : index
    %c0_3 = arith.constant 0 : index
    %4 = vector.load %arg3[%c0_2, %c0_3] : memref<32x128xf32, #tpu.memory_space<vmem>>, vector<32x128xf32>
    %cst = arith.constant dense<0.000000e+00> : vector<8x128xf32>
    %5 = tpu.matmul %0, %4, %cst {dimension_numbers = #tpu.dot_dimension_numbers<[1], [0], [0], [1], [0, 0, 1, 1], [], []>} : vector<8x32xf32>, vector<32x128xf32>, vector<8x128xf32> -> vector<8x128xf32>
    %c0_4 = arith.constant 0 : index
    %c0_5 = arith.constant 0 : index
    %6 = vector.load %arg4[%c0_4, %c0_5] : memref<1x128xf32, #tpu.memory_space<vmem>>, vector<1x128xf32>
    %7 = vector.broadcast %6 : vector<1x128xf32> to vector<8x128xf32>
    %8 = arith.addf %5, %7 : vector<8x128xf32>
    %cst_6 = arith.constant 0.000000e+00 : f32
    %9 = vector.broadcast %cst_6 : f32 to vector<8x128xf32>
    %10 = arith.maximumf %8, %9 : vector<8x128xf32>
    %c0_7 = arith.constant 0 : index
    %c0_8 = arith.constant 0 : index
    %11 = vector.load %arg8[%c0_7, %c0_8] : memref<8x32xf32, #tpu.memory_space<vmem>>, vector<8x32xf32>
    %c0_9 = arith.constant 0 : index
    %c0_10 = arith.constant 0 : index
    %12 = vector.load %arg5[%c0_9, %c0_10] : memref<128x32xf32, #tpu.memory_space<vmem>>, vector<128x32xf32>
    %cst_11 = arith.constant dense<0.000000e+00> : vector<8x32xf32>
    %13 = tpu.matmul %10, %12, %cst_11 {dimension_numbers = #tpu.dot_dimension_numbers<[1], [0], [0], [1], [0, 0, 1, 1], [], []>} : vector<8x128xf32>, vector<128x32xf32>, vector<8x32xf32> -> vector<8x32xf32>
    %14 = arith.addf %11, %13 : vector<8x32xf32>
    %c0_12 = arith.constant 0 : index
    %c0_13 = arith.constant 0 : index
    %15 = vector.load %arg8[%c0_12, %c0_13] : memref<8x32xf32, #tpu.memory_space<vmem>>, vector<8x32xf32>
    tpu.vector_store %arg8[%c0_12, %c0_13], %14 {strides = array<i32>} : memref<8x32xf32, #tpu.memory_space<vmem>>, vector<8x32xf32>,
    %c0_i32_14 = arith.constant 0 : i32
    %16 = arith.cmpi eq, %arg1, %c0_i32_14 : i32
    %17 = arith.extui %16 : i1 to i32
    %c0_i32_15 = arith.constant 0 : i32
    %18 = arith.cmpi ne, %17, %c0_i32_15 : i32
    scf.if %18 {
      %c0_16 = arith.constant 0 : index
      %c0_17 = arith.constant 0 : index
      %19 = vector.load %arg8[%c0_16, %c0_17] : memref<8x32xf32, #tpu.memory_space<vmem>>, vector<8x32xf32>
      %c0_18 = arith.constant 0 : index
      %c0_19 = arith.constant 0 : index
      %20 = vector.load %arg7[%c0_18, %c0_19] : memref<8x32xf32, #tpu.memory_space<vmem>>, vector<8x32xf32>
      tpu.vector_store %arg7[%c0_18, %c0_19], %19 {strides = array<i32>} : memref<8x32xf32, #tpu.memory_space<vmem>>, vector<8x32xf32>,
    } else {
    }
    return
  }
  func.func @transform_0(%arg0: i32, %arg1: i32) -> (i32, i32) {
    %c0_i32 = arith.constant 0 : i32
    %c0_i32_0 = arith.constant 0 : i32
    return %arg0, %c0_i32 : i32, i32
  }
  func.func @transform_1(%arg0: i32, %arg1: i32) -> (i32, i32) {
    %c0_i32 = arith.constant 0 : i32
    %c0_i32_0 = arith.constant 0 : i32
    return %c0_i32, %arg1 : i32, i32
  }
  func.func @transform_2(%arg0: i32, %arg1: i32) -> (i32, i32) {
    %c0_i32 = arith.constant 0 : i32
    %c0_i32_0 = arith.constant 0 : i32
    return %c0_i32, %arg1 : i32, i32
  }
  func.func @transform_3(%arg0: i32, %arg1: i32) -> (i32, i32) {
    %c0_i32 = arith.constant 0 : i32
    %c0_i32_0 = arith.constant 0 : i32
    return %arg1, %c0_i32 : i32, i32
  }
  func.func @transform_4(%arg0: i32, %arg1: i32) -> (i32, i32) {
    %c0_i32 = arith.constant 0 : i32
    %c0_i32_0 = arith.constant 0 : i32
    %c0_i32_1 = arith.constant 0 : i32
    return %c0_i32, %c0_i32_0 : i32, i32
  }
  func.func @transform_5(%arg0: i32, %arg1: i32) -> (i32, i32) {
    %c0_i32 = arith.constant 0 : i32
    %c0_i32_0 = arith.constant 0 : i32
    return %arg0, %c0_i32 : i32, i32
  }
}

</mosaic_0001>

<bundles_post_ra>
// kernel: pointwise_feed_forward.1
= control target key start
LH: loop header
LB: loop body
LE: loop exit
PB: predicated region body
PF: predicated region fallthrough
CT: control target
= control target key end

     0   :  { %10 = vsyncpa [#allocation4], 0  ;;  %s1055_s0 = inlined_call_operand.vmem [shape: f32[16,32], index: 0, kind: input, shape index: {}]   ;;  %s1056_s1 = inlined_call_operand.vmem [shape: f32[32,128], index: 1, kind: input, shape index: {}]   ;;  %s1057_s2 = inlined_call_operand.vmem [shape: f32[1,128], index: 2, kind: input, shape index: {}]   ;;  %s1058_s3 = inlined_call_operand.vmem [shape: f32[128,32], index: 3, kind: input, shape index: {}]   ;;  %s1059_s4 = inlined_call_operand.vmem [shape: f32[1,32], index: 4, kind: input, shape index: {}]   ;;  %s1060_s5 = inlined_call_operand.hbm [shape: f32[16,32], index: 5, kind: output, shape index: {}]  }
   0x1   :  { %12 = vsyncpa [#allocation4 + $0x1], 0  ;;  %s856_s18 = smov 0   ;;  %s858_s19 = smov 0  }
   0x2   :  { %s860_s20 = smov 0   ;;  %s862_s21 = smov 0  }
   0x3   :  { %s864_s22 = smov 0   ;;  %s866_s23 = smov 0  }
   0x4 LB: > { %s603_s24 = sadd.s32 4294967295, %s821_s23   ;;  %s604_s25 = sadd.s32 4294967294, %s821_s23   ;;  %s821_s23 = sphi %s866_s23, %s18_s23   ;;  %s817_s22 = sphi %s864_s22, %s1067_s22   ;;  %s813_s21 = sphi %s862_s21, %s1066_s21   ;;  %s809_s20 = sphi %s860_s20, %s1065_s20   ;;  %s805_s19 = sphi %s858_s19, %s1064_s19   ;;  %s801_s18 = sphi %s856_s18, %s1063_s18  }
   0x5   : > { %s30_s26 = sadd.s32 1, %s817_s22  ;;  %s162_s27 = sadd.s32 1, %s809_s20 }
   0x6   : > { %p32_p0 = scmp.ge.s32.totalorder %s30_s26, 2  ;;  %p172_p1 = scmp.ne.s32.totalorder %s809_s20, %s805_s19 }
   0x7   : > { %p173_p2 = scmp.eq.s32.totalorder %s603_s24, 1  ;;  %p178_p3 = scmp.ne.s32.totalorder %s805_s19, %s801_s18 }
   0x8   : > { %s1069_s26 = smov (%p32_p0, %s30_s26), 0  ;;  %p179_p5 = scmp.eq.s32.totalorder %s604_s25, 1 }
   0x9   : > { %p896_p4 = por %p173_p2, %p172_p1  ;;  %s159_s29 = ssub.s32 %s817_s22, %s1069_s26 }
   0xa   : > { %p610_p6 = scmp.ge.s32.totalorder %s821_s23, 1  ;;  %p160_p7 = scmp.eq.s32.totalorder %s159_s29, 0 }
   0xb   : > { %p903_p8 = por %p179_p5, %p178_p3  ;;  %p229_p9 = scmp.lt.s32.totalorder %s821_s23, 3 }
   0xc   : > { %s909_s6 = scalar_select %p160_p7, %s809_s20, %s162_s27  }
   0xd   : > { %p230_p10 = pnand %p610_p6, %p229_p9 }
   0xe   : > { %p268_p11 = scmp.lt.s32.totalorder (!%p230_p10), %s813_s21, 1  ;;  %s265_s11 = sand.u32 (!%p230_p10), 1, %s805_s19  }
   0xf   : > { %233 = sbr.rel (%p230_p10) target bundleno = 442 (0x1ba), region = 40  ;;  %s481_s25 = scalar_lea.sflag (!%p230_p10), [#allocation4], %s265_s11 }
  0x10   : > { %s825_s29 = smov (!%p230_p10), [#allocation3]  }
  0x11   : > { %s749_s7 = sshll.u32 (!%p230_p10), %s825_s29, 4  ;;  %s750_s7 = int_to_ptr.vmem [resolvable:$false] %s749_s7 }
  0x14   : > { %v303_v0 = vld [vmem:[%s1056_s1 + $0x18] sm:$0xff]  ;;  %v823_v1 = vmov 0.0   ;;  %v302_v2 = vld [vmem:[%s1056_s1 + $0x10] sm:$0xff]  ;;  %vm824_vm0 = vmmov 0   ;;  %s269_s13 = scalar_select %p268_p11, %s813_s21, 1  ;;  %v301_v5 = vld [vmem:[%s1056_s1 + $0x8] sm:$0xff] }
  0x15   : > { %642 = vmatprep.subr.mxu0 %v823_v1  ;;  %650 = vmatprep.mubr.msk.f32.mxu0 %vm824_vm0, %v823_v1  ;;  %v402_v3 = vld [vmem:[%s1058_s3 + $0x78] sm:$0xff]  ;;  %v401_v4 = vld [vmem:[%s1058_s3 + $0x70] sm:$0xff]  ;;  %v613_v6 = vld [vmem:[%s1059_s4] ss:$0 sm:$0xff]  ;;  %vm298_vm1 = vcmask 261120  }
  0x16   : > { %643 = vmatpush3.msra.mxu0 %v303_v0  ;;  %653 = vmatprep.subr.mxu1 %v823_v1  ;;  %s612_s24 = sshll.u32 %s269_s13, 3  ;;  %v400_v7 = vld [vmem:[%s1058_s3 + $0x68] sm:$0xff]  ;;  %v300_v8 = vld [vmem:[%s1056_s1] sm:$0xff]  ;;  %v398_v12 = vld [vmem:[%s1058_s3 + $0x58] sm:$0xff]  ;;  %s617_s13 = sshll.u32 %s813_s21, 7 }
  0x17   : > { %644 = vmatprep.subr.mxu0 %v823_v1  ;;  %654 = vmatpush3.msra.mxu1 %v402_v3  ;;  %s271_s12 = scalar_lea.vmem %s1055_s0, %s612_s24  ;;  %v399_v10 = vld [vmem:[%s1058_s3 + $0x60] sm:$0xff]  ;;  %v397_v13 = vld [vmem:[%s1058_s3 + $0x50] sm:$0xff]  ;;  %v396_v14 = vld [vmem:[%s1058_s3 + $0x48] sm:$0xff]  ;;  %s1014_s24 = scalar_lea.hbm %s1060_s5, %s617_s13 }
  0x18   : > { %645 = vmatpush3.msra.mxu0 %v302_v2  ;;  %655 = vmatprep.subr.mxu1 %v823_v1  ;;  %v285_v9 = vld [vmem:[%s271_s12] sm:$0xff]  ;;  %v394_v16 = vld [vmem:[%s1058_s3 + $0x38] sm:$0xff]  ;;  %v393_v17 = vld [vmem:[%s1058_s3 + $0x30] sm:$0xff]  ;;  %s611_s12 = sshll.u32 %s265_s11, 3  ;;  %s751_s21 = scalar_lea.vmem %s750_s7, 256 }
  0x19   : > { %646 = vmatprep.subr.mxu0 %v823_v1  ;;  %656 = vmatpush3.msra.mxu1 %v401_v4  ;;  %v297_v11 = vadd.f32 %v613_v6, %v285_v9  ;;  %v395_v15 = vld [vmem:[%s1058_s3 + $0x40] sm:$0xff]  ;;  %v392_v18 = vld [vmem:[%s1058_s3 + $0x28] sm:$0xff]  ;;  %v390_v20 = vld [vmem:[%s1058_s3 + $0x18] sm:$0xff]  ;;  %s267_s14 = scalar_lea.vmem [#allocation3], %s611_s12 }
  0x1a   : > { %647 = vmatpush3.msra.mxu0 %v301_v5  ;;  %657 = vmatprep.subr.mxu1 %v823_v1  ;;  %v391_v19 = vld [vmem:[%s1058_s3 + $0x20] sm:$0xff]  ;;  %v389_v21 = vld [vmem:[%s1058_s3 + $0x10] sm:$0xff]  ;;  %v388_v22 = vld [vmem:[%s1058_s3 + $0x8] sm:$0xff]  ;;  %s494_s15 = sshll.u32 %s267_s14, 4  ;;  %s495_s15 = int_to_ptr.vmem [resolvable:$true] %s494_s15 }
  0x1b   : > { %648 = vmatprep.subr.mxu0 %v823_v1  ;;  %658 = vmatpush3.msra.mxu1 %v400_v7  ;;  %299 = vst.msk [vmem:[#allocation2] sm:$0xff] %vm298_vm1, %v297_v11  ;;  %v387_v23 = vld [vmem:[%s1058_s3] sm:$0xff]  ;;  %s745_s27 = scalar_lea.vmem %s495_s15, 128  ;;  %p752_p1 = scmp.lt.s32.totalorder %s495_s15, %s750_s7 }
  0x1c   : > { %649 = vmatpush3.msra.mxu0 %v300_v8  ;;  %659 = vmatprep.subr.mxu1 %v823_v1  ;;  %v614_v24 = vld [vmem:[%s1057_s2] ss:$0 sm:$0xff]  ;;  %p746_p12 = scmp.ne.s32.totalorder %s495_s15, %s745_s27  ;;  %p753_p2 = scmp.lt.s32.totalorder %s751_s21, %s745_s27 }
  0x1d   : > { %651 = vmatmul.mubr.msk.f32.vlgmr.msra.gmra.mxu0 %vm298_vm1, %v285_v9  ;;  %660 = vmatpush3.msra.mxu1 %v399_v10 }
  0x1e   : > { %661 = vmatprep.subr.mxu1 %v823_v1  ;;  %685 = vmatprep.mubr.msk.f32.mxu1 %vm824_vm0, %v823_v1  ;;  %p747_p13 = pnand %p746_p12, %p896_p4  ;;  %p754_p3 = por %p753_p2, %p752_p1 }
  0x1f   : > { %662 = vmatpush3.msra.mxu1 %v398_v12 }
  0x20   : > { %663 = vmatprep.subr.mxu1 %v823_v1  ;;  %p748_p0 = pneg %p747_p13 }
  0x21   : > { %664 = vmatpush3.msra.mxu1 %v397_v13 }
  0x22   : > { %665 = vmatprep.subr.mxu1 %v823_v1  ;;  %v386_v29 = vld [vmem:[#allocation2] sm:$0xff]  ;;  %p755_p5 = pnand %p754_p3, %p748_p0 }
  0x23   : > { %666 = vmatpush3.msra.mxu1 %v396_v14 }
  0x24   : > { %667 = vmatprep.subr.mxu1 %v823_v1 }
  0x25   : > { %668 = vmatpush3.msra.mxu1 %v395_v15 }
  0x26   : > { %669 = vmatprep.subr.mxu1 %v823_v1 }
  0x27   : > { %670 = vmatpush3.msra.mxu1 %v394_v16 }
  0x28   : > { %671 = vmatprep.subr.mxu1 %v823_v1 }
  0x29   : > { %672 = vmatpush3.msra.mxu1 %v393_v17 }
  0x2a   : > { %673 = vmatprep.subr.mxu1 %v823_v1 }
  0x2b   : > { %674 = vmatpush3.msra.mxu1 %v392_v18 }
  0x2c   : > { %675 = vmatprep.subr.mxu1 %v823_v1 }
  0x2d   : > { %676 = vmatpush3.msra.mxu1 %v391_v19 }
  0x2e   : > { %677 = vmatprep.subr.mxu1 %v823_v1 }
  0x2f   : > { %678 = vmatpush3.msra.mxu1 %v390_v20 }
  0x30   : > { %679 = vmatprep.subr.mxu1 %v823_v1 }
  0x31   : > { %680 = vmatpush3.msra.mxu1 %v389_v21 }
  0x32   : > { %681 = vmatprep.subr.mxu1 %v823_v1 }
  0x33   : > { %682 = vmatpush3.msra.mxu1 %v388_v22 }
  0x34   : > { %683 = vmatprep.subr.mxu1 %v823_v1 }
  0x35   : > { %684 = vmatpush3.msra.mxu1 %v387_v23 }
  0xdd   : > { %v381_v25 = vpop.f32.mrf.mxu0 }
  0xde   : > { %v382_v26 = vadd.f32 %v614_v24, %v381_v25 }
  0xdf   : > { %v652_v27 = vpop.f32.mrf.mxu0 }
  0xe0   : > { %v385_v28 = vmax.f32 %v382_v26, 0.0 }
  0xe2   : > { %686 = vmatmul.mubr.f32.vlgmr.msra.gmra.mxu1 %v385_v28 }
 0x1a2   : > { %v469_v30 = vpop.f32.mrf.mxu1 }
 0x1a3   : > { %v473_v31 = vadd.f32 %v469_v30, %v386_v29 }
 0x1a4   : > { %v687_v32 = vpop.f32.mrf.mxu1 }
 0x1a5   : > { %474 = vst.msk [vmem:[#allocation2] sm:$0xff] %vm298_vm1, %v473_v31 }
 0x1ac   : > { %v478_v33 = vld [vmem:[#allocation2] sm:$0xff] }
 0x1ad   : > { %479 = vst.msk [vmem:[%s267_s14] sm:$0xff] %vm298_vm1, %v478_v33 }
 0x1ae   : > { %758 = shalt.err (!%p755_p5)
}
 0x1af   : > { %s759_s8 = scalar_lea.hbm %s1014_s24, 128  ;;  %s763_s11 = scalar_lea.hbm %s1060_s5, 256 }
 0x1b0   : > { %p760_p6 = scmp.ne.s32.totalorder %s1014_s24, %s759_s8  ;;  %p764_p10 = scmp.lt.s32.totalorder %s1014_s24, %s1060_s5 }
 0x1b1   : > { %p765_p11 = scmp.lt.s32.totalorder %s763_s11, %s759_s8 }
 0x1b2   : > { %p761_p7 = pnand %p760_p6, %p896_p4 }
 0x1b3   : > { %p766_p12 = por %p765_p11, %p764_p10 }
 0x1b4   : > { %p762_p9 = pneg %p761_p7 }
 0x1b6   : > { %p767_p13 = pnand %p766_p12, %p762_p9 }
 0x1b8   : > { %770 = shalt.err (!%p767_p13)
}
 0x1b9   : > { %688 = dma.vmem_to_hbm [thread:$0]  (%p896_p4), %s495_s15, 128, %s1014_s24, %s481_s25  }
 0x1ba PF: > { %p694_p0 = scmp.ge.s32.totalorder %s821_s23, 2  ;;  %s506_s14 = sand.u32 1, %s801_s18  }
 0x1bb   : > { %s507_s16 = scalar_lea.sflag [#allocation4], %s506_s14 }
 0x1bc   : > { %p691_p1 = pnand %p694_p0, %p903_p8 }
 0x1be   : > { %p692_p2 = pneg %p691_p1 }
 0x1c0   : > { %796 = dma.done.wait (%p692_p2), %s507_s16, 128  }
 0x1c1   : > { %798 = vsyncadd (%p692_p2), %s507_s16, 4294967168  ;;  %s18_s23 = sadd.s32 1, %s821_s23   ;;  %s1063_s18 = smov %s805_s19 }
 0x1c2   : > { %p15_p3 = scmp.ge.s32.totalorder %s18_s23, 4   ;;  %s1064_s19 = smov %s809_s20 }
 0x1c3   : > { %s1065_s20 = smov %s909_s6  ;;  %s1066_s21 = smov %s817_s22 }
 0x1c4   : > { %s1067_s22 = smov %s1069_s26  ;;  %17 = sbr.rel (!%p15_p3) target bundleno = 4 (0x4), region = 92 }
 0x1c9   :  { %512 = vsyncpa [#allocation4], 1 }
 0x1ca   :  { %514 = vsyncpa [#allocation4 + $0x1], 1 }

</bundles_post_ra>
